<compile_context>
chip_gen: v5e
topology: v5e:2x2
jax: 0.10.0
libtpu: 0.0.40
codegen_flags: <defaults>
</compile_context>

<pallas_src>
import functools

import jax
import jax.numpy as jnp
from jax.experimental import pallas as pl
from jax.experimental.pallas import tpu as pltpu

POLY_ORDER = 3
LOOKUP_STEPS = 20000
LN_EPS = 1e-5
LANE = 128


def _silu(x):
    return x * jax.nn.sigmoid(x)


def _round_up(v, m):
    return ((v + m - 1) // m) * m


# ---------------------------------------------------------------------------
# Pallas kernel: the entire MLKAN forward, all layers fused, VMEM resident.
# ---------------------------------------------------------------------------
def mlkan_fused_kernel(layer_dims, x_ref, *refs):
    """refs = [w0, bias0, g0, b0, w1, bias1, g1, b1, ..., o_ref, basis_scratch].

    layer_dims: static tuple of (in_f, out_f, in_pad, out_pad) per layer.
    All padded columns of the activation `x` are exact zeros on entry to each
    layer (guaranteed by zero-padded weights / bias / gamma / beta + SiLU(0)=0).
    """
    basis_ref = refs[-1]          # (B, 4*max_in_pad) VMEM scratch
    o_ref = refs[-2]
    n = LOOKUP_STEPS - 1

    x = x_ref[...]                # (B, in_pad0) f32, padded cols == 0

    for li, (in_f, out_f, in_pad, out_pad) in enumerate(layer_dims):
        w_ref = refs[4 * li]              # (4*in_pad, out_pad)
        bias = refs[4 * li + 1][...]      # (1, out_pad)  folded T0 term
        gamma = refs[4 * li + 2][...]     # (1, out_pad)  (padded cols = 0)
        beta = refs[4 * li + 3][...]      # (1, out_pad)  (padded cols = 0)

        # --- global min/max over the *valid* input columns ------------------
        if in_pad == in_f:
            x_min = jnp.min(x)
            x_max = jnp.max(x)
        else:
            col = jax.lax.broadcasted_iota(jnp.int32, x.shape, 1)
            valid = col < in_f
            x_min = jnp.min(jnp.where(valid, x, jnp.inf))
            x_max = jnp.max(jnp.where(valid, x, -jnp.inf))

        x_norm = 2.0 * (x - x_min) / (x_max - x_min) - 1.0

        # Quantize onto the 20000-step lookup grid.  floor == trunc since the
        # argument is >= 0 on valid columns; padded columns only ever multiply
        # zero weight rows, so their (finite) values are irrelevant.
        x_q = -1.0 + jnp.floor((x_norm + 1.0) * 0.5 * n) * (2.0 / n)

        # Chebyshev T1..T3 at the grid point (T0 == 1 folded into `bias`).
        t1 = x_q
        t2 = 2.0 * x_q * t1 - 1.0
        t3 = 2.0 * x_q * t2 - t1

        # Assemble the lane-dense basis [SiLU(x) | T1 | T2 | T3] in VMEM and
        # run ONE deep-K MXU dot for base + poly combined.
        basis_ref[:, 0:in_pad] = _silu(x)
        basis_ref[:, in_pad:2 * in_pad] = t1
        basis_ref[:, 2 * in_pad:3 * in_pad] = t2
        basis_ref[:, 3 * in_pad:4 * in_pad] = t3
        basis = basis_ref[:, 0:4 * in_pad]                    # (B, 4*in_pad)
        h = jnp.dot(basis, w_ref[...],
                    preferred_element_type=jnp.float32) + bias

        # --- LayerNorm over the real out_f columns (padded h cols are 0) ----
        mean = jnp.sum(h, axis=-1, keepdims=True) * (1.0 / out_f)
        if out_pad == out_f:
            diff = h - mean
        else:
            ocol = jax.lax.broadcasted_iota(jnp.int32, h.shape, 1)
            diff = jnp.where(ocol < out_f, h - mean, 0.0)
        var = jnp.sum(diff * diff, axis=-1, keepdims=True) * (1.0 / out_f)
        h_norm = (h - mean) * jax.lax.rsqrt(var + LN_EPS)
        # Padded gamma/beta are zero -> padded columns are exactly 0 -> SiLU(0)=0,
        # so the invariant on `x` holds for the next layer.
        x = _silu(h_norm * gamma + beta)

    o_ref[...] = x   # (B, out_pad_last), lane-dense store


# ---------------------------------------------------------------------------
# One-time parameter re-layout (outside the jitted forward).
# ---------------------------------------------------------------------------
def prepare_params(params):
    """params[l] = (base_w (out,in), poly_w (out, in*(order+1)), gamma (out,), beta (out,)).

    Returns (prepared, layer_dims):
      prepared[l]  = (w_cat (4*in_pad, out_pad), bias (1,out_pad),
                      gamma (1,out_pad), beta (1,out_pad))
      layer_dims[l] = (in_f, out_f, in_pad, out_pad)   (static python ints)
    """
    prepared = []
    layer_dims = []
    prev_out_pad = None
    for li, (base_w, poly_w, ln_g, ln_b) in enumerate(params):
        out_f, in_f = base_w.shape
        in_pad = _round_up(in_f, LANE) if li == 0 else prev_out_pad
        out_pad = _round_up(out_f, LANE)

        pw = poly_w.reshape(out_f, in_f, POLY_ORDER + 1)     # [o, i, k]
        # T0(x) == 1 for every element: fold its weights into a bias.
        bias = jnp.sum(pw[:, :, 0], axis=1)                  # (out_f,)

        blocks = [jnp.transpose(base_w)]                     # SiLU(x) path (in, out)
        for k in range(1, POLY_ORDER + 1):
            blocks.append(jnp.transpose(pw[:, :, k]))        # T_k path (in, out)
        blocks = [jnp.pad(blk, ((0, in_pad - in_f), (0, out_pad - out_f)))
                  for blk in blocks]
        w_cat = jnp.concatenate(blocks, axis=0)              # (4*in_pad, out_pad)

        bias_p = jnp.pad(bias, (0, out_pad - out_f)).reshape(1, out_pad)
        g_p = jnp.pad(ln_g, (0, out_pad - out_f)).reshape(1, out_pad)  # pad = 0
        b_p = jnp.pad(ln_b, (0, out_pad - out_f)).reshape(1, out_pad)  # pad = 0

        prepared.append((w_cat, bias_p, g_p, b_p))
        layer_dims.append((in_f, out_f, in_pad, out_pad))
        prev_out_pad = out_pad
    return tuple(prepared), tuple(layer_dims)


# ---------------------------------------------------------------------------
# Jitted forward: one pallas_call for the whole network.
# ---------------------------------------------------------------------------
@functools.partial(jax.jit, static_argnames=("layer_dims",))
def mlkan_forward(x, prepared, layer_dims):
    B = x.shape[0]
    in_f0, _, in_pad0, _ = layer_dims[0]
    out_f_last = layer_dims[-1][1]
    out_pad_last = layer_dims[-1][3]
    max_basis = max(4 * d[2] for d in layer_dims)

    # Lane-pad the input activation (padded columns are exact zeros).
    if in_pad0 != in_f0:
        x = jnp.pad(x, ((0, 0), (0, in_pad0 - in_f0)))

    flat_inputs = [x]
    in_specs = [pl.BlockSpec((B, in_pad0), lambda i: (0, 0))]
    for layer_params in prepared:
        for arr in layer_params:
            flat_inputs.append(arr)
            in_specs.append(pl.BlockSpec(arr.shape, lambda i: (0, 0)))

    out_padded = pl.pallas_call(
        functools.partial(mlkan_fused_kernel, layer_dims),
        out_shape=jax.ShapeDtypeStruct((B, out_pad_last), jnp.float32),
        grid=(1,),
        in_specs=in_specs,
        out_specs=pl.BlockSpec((B, out_pad_last), lambda i: (0, 0)),
        scratch_shapes=[pltpu.VMEM((B, max_basis), jnp.float32)],
        compiler_params=pltpu.CompilerParams(
            dimension_semantics=("arbitrary",)),
    )(*flat_inputs)
    return out_padded[:, :out_f_last]


# ---------------------------------------------------------------------------
# Pure-JAX reference (explicit lookup-table gather), mirrors torch semantics.
# ---------------------------------------------------------------------------
def _build_lookup_table():
    xs = jnp.linspace(-1.0, 1.0, LOOKUP_STEPS)
    polys = [jnp.ones_like(xs), xs]
    for _ in range(1, POLY_ORDER):
        polys.append(2.0 * xs * polys[-1] - polys[-2])
    return jnp.stack(polys, axis=-1)  # (STEPS, order+1)


def mlkan_reference(x, params):
    table = _build_lookup_table()
    for (bw, pw, g, b) in params:
        base_out = _silu(x) @ bw.T
        x_norm = 2.0 * (x - x.min()) / (x.max() - x.min()) - 1.0
        idx = ((x_norm + 1.0) / 2.0 * (LOOKUP_STEPS - 1)).astype(jnp.int32)
        basis = jnp.take(table, idx, axis=0)                    # (B, in, order+1)
        basis = basis.reshape(x.shape[0], -1)                   # (B, in*(order+1))
        poly_out = basis @ pw.T
        h = base_out + poly_out
        mean = jnp.mean(h, axis=-1, keepdims=True)
        var = jnp.mean((h - mean) ** 2, axis=-1, keepdims=True)
        h = (h - mean) * jax.lax.rsqrt(var + LN_EPS) * g + b
        x = _silu(h)
    return x


# ---------------------------------------------------------------------------
if __name__ == "__main__":
    key = jax.random.PRNGKey(0)

    batch = 8
    input_size, hidden_sizes, output_size = 32, [64], 16
    layer_sizes = [input_size] + hidden_sizes + [output_size]

    # Deterministic parameter init (kaiming_uniform, gain=1 for 'linear').
    params = []
    for li in range(len(layer_sizes) - 1):
        fi, fo = layer_sizes[li], layer_sizes[li + 1]
        key, k1, k2 = jax.random.split(key, 3)
        bb = (3.0 / fi) ** 0.5
        base_w = jax.random.uniform(k1, (fo, fi), jnp.float32, -bb, bb)
        pb = (3.0 / (fi * (POLY_ORDER + 1))) ** 0.5
        poly_w = jax.random.uniform(
            k2, (fo, fi * (POLY_ORDER + 1)), jnp.float32, -pb, pb)
        ln_g = jnp.ones((fo,), jnp.float32)
        ln_b = jnp.zeros((fo,), jnp.float32)
        params.append((base_w, poly_w, ln_g, ln_b))

    # One-time kernel-layout preparation (transpose / fuse / pad / T0 bias).
    prepared, layer_dims = prepare_params(params)

    key, kx = jax.random.split(key)
    x = jax.random.normal(kx, (batch, input_size), dtype=jnp.float32)

    y = mlkan_forward(x, prepared, layer_dims)
    y = jax.block_until_ready(y)

    y_ref = mlkan_reference(x, params)
    assert y.shape == (batch, output_size)
    # Tolerance 1e-3: kernel and reference compute intermediates with different
    # (but both f32) accumulation orders; near a lookup-grid boundary the
    # quantization index can flip by one step (~1e-4-level output difference),
    # identical to the behavior of the torch module under op reordering.
    assert jnp.allclose(y, y_ref, rtol=1e-3, atol=1e-3), "mismatch vs reference"

    print("KERNEL_OK")
</pallas_src>

<mosaic_0001>
module attributes {stable_mosaic.version = 11 : i64} {
  func.func @mlkan_fused_kernel(%arg0: i32, %arg1: memref<8x128xf32, #tpu.memory_space<vmem>>, %arg2: memref<512x128xf32, #tpu.memory_space<vmem>>, %arg3: memref<1x128xf32, #tpu.memory_space<vmem>>, %arg4: memref<1x128xf32, #tpu.memory_space<vmem>>, %arg5: memref<1x128xf32, #tpu.memory_space<vmem>>, %arg6: memref<512x128xf32, #tpu.memory_space<vmem>>, %arg7: memref<1x128xf32, #tpu.memory_space<vmem>>, %arg8: memref<1x128xf32, #tpu.memory_space<vmem>>, %arg9: memref<1x128xf32, #tpu.memory_space<vmem>>, %arg10: memref<8x128xf32, #tpu.memory_space<vmem>>, %arg11: memref<8x512xf32, #tpu.memory_space<vmem>>) attributes {dimension_semantics = [#tpu.dimension_semantics<arbitrary>], iteration_bounds = array<i64: 1>, scalar_prefetch = 0 : i64, scratch_operands = 1 : i64, tpu.core_type = #tpu.core_type<tc>, window_params = [{pipeline_mode = #tpu.pipeline_mode<synchronous>, transform_indices = @transform_0, window_bounds = array<i64: 8, 128>}, {pipeline_mode = #tpu.pipeline_mode<synchronous>, transform_indices = @transform_1, window_bounds = array<i64: 512, 128>}, {pipeline_mode = #tpu.pipeline_mode<synchronous>, transform_indices = @transform_2, window_bounds = array<i64: 1, 128>}, {pipeline_mode = #tpu.pipeline_mode<synchronous>, transform_indices = @transform_3, window_bounds = array<i64: 1, 128>}, {pipeline_mode = #tpu.pipeline_mode<synchronous>, transform_indices = @transform_4, window_bounds = array<i64: 1, 128>}, {pipeline_mode = #tpu.pipeline_mode<synchronous>, transform_indices = @transform_5, window_bounds = array<i64: 512, 128>}, {pipeline_mode = #tpu.pipeline_mode<synchronous>, transform_indices = @transform_6, window_bounds = array<i64: 1, 128>}, {pipeline_mode = #tpu.pipeline_mode<synchronous>, transform_indices = @transform_7, window_bounds = array<i64: 1, 128>}, {pipeline_mode = #tpu.pipeline_mode<synchronous>, transform_indices = @transform_8, window_bounds = array<i64: 1, 128>}, {pipeline_mode = #tpu.pipeline_mode<synchronous>, transform_indices = @transform_9, window_bounds = array<i64: 8, 128>}]} {
    %c0 = arith.constant 0 : index
    %c0_0 = arith.constant 0 : index
    %0 = vector.load %arg1[%c0, %c0_0] : memref<8x128xf32, #tpu.memory_space<vmem>>, vector<8x128xf32>
    %c0_1 = arith.constant 0 : index
    %c0_2 = arith.constant 0 : index
    %1 = vector.load %arg3[%c0_1, %c0_2] : memref<1x128xf32, #tpu.memory_space<vmem>>, vector<1x128xf32>
    %c0_3 = arith.constant 0 : index
    %c0_4 = arith.constant 0 : index
    %2 = vector.load %arg4[%c0_3, %c0_4] : memref<1x128xf32, #tpu.memory_space<vmem>>, vector<1x128xf32>
    %c0_5 = arith.constant 0 : index
    %c0_6 = arith.constant 0 : index
    %3 = vector.load %arg5[%c0_5, %c0_6] : memref<1x128xf32, #tpu.memory_space<vmem>>, vector<1x128xf32>
    %4 = tpu.iota {dimensions = array<i32: 1>} : vector<8x128xi32>
    %c32_i32 = arith.constant 32 : i32
    %5 = vector.broadcast %c32_i32 : i32 to vector<8x128xi32>
    %6 = arith.cmpi slt, %4, %5 : vector<8x128xi32>
    %cst = arith.constant 0x7F800000 : f32
    %7 = vector.broadcast %cst : f32 to vector<8x128xf32>
    %8 = arith.select %6, %0, %7 : vector<8x128xi1>, vector<8x128xf32>
    %9 = vector.shape_cast %8 : vector<8x128xf32> to vector<1x8x128xf32>
    %cst_7 = arith.constant dense<0x7F800000> : vector<1xf32>
    %10 = vector.multi_reduction <minimumf>, %9, %cst_7 [1, 2] : vector<1x8x128xf32> to vector<1xf32>
    %11 = vector.shape_cast %10 : vector<1xf32> to vector<1x1x1xf32>
    %12 = vector.extract %11[0, 0, 0] : f32 from vector<1x1x1xf32>
    %cst_8 = arith.constant 0xFF800000 : f32
    %13 = vector.broadcast %cst_8 : f32 to vector<8x128xf32>
    %14 = arith.select %6, %0, %13 : vector<8x128xi1>, vector<8x128xf32>
    %15 = vector.shape_cast %14 : vector<8x128xf32> to vector<1x8x128xf32>
    %cst_9 = arith.constant dense<0xFF800000> : vector<1xf32>
    %16 = vector.multi_reduction <maximumf>, %15, %cst_9 [1, 2] : vector<1x8x128xf32> to vector<1xf32>
    %17 = vector.shape_cast %16 : vector<1xf32> to vector<1x1x1xf32>
    %18 = vector.extract %17[0, 0, 0] : f32 from vector<1x1x1xf32>
    %19 = vector.broadcast %12 : f32 to vector<8x128xf32>
    %20 = arith.subf %0, %19 : vector<8x128xf32>
    %cst_10 = arith.constant 2.000000e+00 : f32
    %21 = vector.broadcast %cst_10 : f32 to vector<8x128xf32>
    %22 = arith.mulf %21, %20 : vector<8x128xf32>
    %23 = arith.subf %18, %12 : f32
    %24 = vector.broadcast %23 : f32 to vector<8x128xf32>
    %25 = arith.divf %22, %24 : vector<8x128xf32>
    %cst_11 = arith.constant 1.000000e+00 : f32
    %26 = vector.broadcast %cst_11 : f32 to vector<8x128xf32>
    %27 = arith.subf %25, %26 : vector<8x128xf32>
    %cst_12 = arith.constant 1.000000e+00 : f32
    %28 = vector.broadcast %cst_12 : f32 to vector<8x128xf32>
    %29 = arith.addf %27, %28 : vector<8x128xf32>
    %cst_13 = arith.constant 5.000000e-01 : f32
    %30 = vector.broadcast %cst_13 : f32 to vector<8x128xf32>
    %31 = arith.mulf %29, %30 : vector<8x128xf32>
    %cst_14 = arith.constant 1.999900e+04 : f32
    %32 = vector.broadcast %cst_14 : f32 to vector<8x128xf32>
    %33 = arith.mulf %31, %32 : vector<8x128xf32>
    %34 = math.floor %33 : vector<8x128xf32>
    %cst_15 = arith.constant 1.000050e-04 : f32
    %35 = vector.broadcast %cst_15 : f32 to vector<8x128xf32>
    %36 = arith.mulf %34, %35 : vector<8x128xf32>
    %cst_16 = arith.constant -1.000000e+00 : f32
    %37 = vector.broadcast %cst_16 : f32 to vector<8x128xf32>
    %38 = arith.addf %37, %36 : vector<8x128xf32>
    %cst_17 = arith.constant 2.000000e+00 : f32
    %39 = vector.broadcast %cst_17 : f32 to vector<8x128xf32>
    %40 = arith.mulf %39, %38 : vector<8x128xf32>
    %41 = arith.mulf %40, %38 : vector<8x128xf32>
    %cst_18 = arith.constant 1.000000e+00 : f32
    %42 = vector.broadcast %cst_18 : f32 to vector<8x128xf32>
    %43 = arith.subf %41, %42 : vector<8x128xf32>
    %cst_19 = arith.constant 2.000000e+00 : f32
    %44 = vector.broadcast %cst_19 : f32 to vector<8x128xf32>
    %45 = arith.mulf %44, %38 : vector<8x128xf32>
    %46 = arith.mulf %45, %43 : vector<8x128xf32>
    %47 = arith.subf %46, %38 : vector<8x128xf32>
    %48 = arith.negf %0 : vector<8x128xf32>
    %49 = math.exp %48 : vector<8x128xf32>
    %cst_20 = arith.constant 1.000000e+00 : f32
    %50 = vector.broadcast %cst_20 : f32 to vector<8x128xf32>
    %51 = arith.addf %50, %49 : vector<8x128xf32>
    %52 = arith.divf %50, %51 : vector<8x128xf32>
    %53 = arith.mulf %0, %52 : vector<8x128xf32>
    %c0_21 = arith.constant 0 : index
    %c0_22 = arith.constant 0 : index
    %54 = vector.load %arg11[%c0_21, %c0_22] : memref<8x512xf32, #tpu.memory_space<vmem>>, vector<8x128xf32>
    tpu.vector_store %arg11[%c0_21, %c0_22], %53 {strides = array<i32>} : memref<8x512xf32, #tpu.memory_space<vmem>>, vector<8x128xf32>,
    %c0_23 = arith.constant 0 : index
    %c128 = arith.constant 128 : index
    %55 = vector.load %arg11[%c0_23, %c128] : memref<8x512xf32, #tpu.memory_space<vmem>>, vector<8x128xf32>
    tpu.vector_store %arg11[%c0_23, %c128], %38 {strides = array<i32>} : memref<8x512xf32, #tpu.memory_space<vmem>>, vector<8x128xf32>,
    %c0_24 = arith.constant 0 : index
    %c256 = arith.constant 256 : index
    %56 = vector.load %arg11[%c0_24, %c256] : memref<8x512xf32, #tpu.memory_space<vmem>>, vector<8x128xf32>
    tpu.vector_store %arg11[%c0_24, %c256], %43 {strides = array<i32>} : memref<8x512xf32, #tpu.memory_space<vmem>>, vector<8x128xf32>,
    %c0_25 = arith.constant 0 : index
    %c384 = arith.constant 384 : index
    %57 = vector.load %arg11[%c0_25, %c384] : memref<8x512xf32, #tpu.memory_space<vmem>>, vector<8x128xf32>
    tpu.vector_store %arg11[%c0_25, %c384], %47 {strides = array<i32>} : memref<8x512xf32, #tpu.memory_space<vmem>>, vector<8x128xf32>,
    %c0_26 = arith.constant 0 : index
    %c0_27 = arith.constant 0 : index
    %58 = vector.load %arg11[%c0_26, %c0_27] : memref<8x512xf32, #tpu.memory_space<vmem>>, vector<8x512xf32>
    %c0_28 = arith.constant 0 : index
    %c0_29 = arith.constant 0 : index
    %59 = vector.load %arg2[%c0_28, %c0_29] : memref<512x128xf32, #tpu.memory_space<vmem>>, vector<512x128xf32>
    %cst_30 = arith.constant dense<0.000000e+00> : vector<8x128xf32>
    %60 = tpu.matmul %58, %59, %cst_30 {dimension_numbers = #tpu.dot_dimension_numbers<[1], [0], [0], [1], [0, 0, 1, 1], [], []>} : vector<8x512xf32>, vector<512x128xf32>, vector<8x128xf32> -> vector<8x128xf32>
    %61 = vector.broadcast %1 : vector<1x128xf32> to vector<8x128xf32>
    %62 = arith.addf %60, %61 : vector<8x128xf32>
    %cst_31 = arith.constant dense<0.000000e+00> : vector<8xf32>
    %63 = vector.multi_reduction <add>, %62, %cst_31 [1] : vector<8x128xf32> to vector<8xf32>
    %64 = vector.shape_cast %63 : vector<8xf32> to vector<8x1xf32>
    %cst_32 = arith.constant 1.562500e-02 : f32
    %65 = vector.broadcast %cst_32 : f32 to vector<8x1xf32>
    %66 = arith.mulf %64, %65 : vector<8x1xf32>
    %67 = tpu.iota {dimensions = array<i32: 1>} : vector<8x128xi32>
    %c64_i32 = arith.constant 64 : i32
    %68 = vector.broadcast %c64_i32 : i32 to vector<8x128xi32>
    %69 = arith.cmpi slt, %67, %68 : vector<8x128xi32>
    %70 = vector.broadcast %66 : vector<8x1xf32> to vector<8x128xf32>
    %71 = arith.subf %62, %70 : vector<8x128xf32>
    %cst_33 = arith.constant 0.000000e+00 : f32
    %72 = vector.broadcast %cst_33 : f32 to vector<8x128xf32>
    %73 = arith.select %69, %71, %72 : vector<8x128xi1>, vector<8x128xf32>
    %74 = arith.mulf %73, %73 : vector<8x128xf32>
    %cst_34 = arith.constant dense<0.000000e+00> : vector<8xf32>
    %75 = vector.multi_reduction <add>, %74, %cst_34 [1] : vector<8x128xf32> to vector<8xf32>
    %76 = vector.shape_cast %75 : vector<8xf32> to vector<8x1xf32>
    %cst_35 = arith.constant 1.562500e-02 : f32
    %77 = vector.broadcast %cst_35 : f32 to vector<8x1xf32>
    %78 = arith.mulf %76, %77 : vector<8x1xf32>
    %79 = vector.broadcast %66 : vector<8x1xf32> to vector<8x128xf32>
    %80 = arith.subf %62, %79 : vector<8x128xf32>
    %cst_36 = arith.constant 9.99999974E-6 : f32
    %81 = vector.broadcast %cst_36 : f32 to vector<8x1xf32>
    %82 = arith.addf %78, %81 : vector<8x1xf32>
    %83 = math.rsqrt %82 : vector<8x1xf32>
    %84 = vector.broadcast %83 : vector<8x1xf32> to vector<8x128xf32>
    %85 = arith.mulf %80, %84 : vector<8x128xf32>
    %86 = vector.broadcast %2 : vector<1x128xf32> to vector<8x128xf32>
    %87 = arith.mulf %85, %86 : vector<8x128xf32>
    %88 = vector.broadcast %3 : vector<1x128xf32> to vector<8x128xf32>
    %89 = arith.addf %87, %88 : vector<8x128xf32>
    %90 = arith.negf %89 : vector<8x128xf32>
    %91 = math.exp %90 : vector<8x128xf32>
    %cst_37 = arith.constant 1.000000e+00 : f32
    %92 = vector.broadcast %cst_37 : f32 to vector<8x128xf32>
    %93 = arith.addf %92, %91 : vector<8x128xf32>
    %94 = arith.divf %92, %93 : vector<8x128xf32>
    %95 = arith.mulf %89, %94 : vector<8x128xf32>
    %c0_38 = arith.constant 0 : index
    %c0_39 = arith.constant 0 : index
    %96 = vector.load %arg7[%c0_38, %c0_39] : memref<1x128xf32, #tpu.memory_space<vmem>>, vector<1x128xf32>
    %c0_40 = arith.constant 0 : index
    %c0_41 = arith.constant 0 : index
    %97 = vector.load %arg8[%c0_40, %c0_41] : memref<1x128xf32, #tpu.memory_space<vmem>>, vector<1x128xf32>
    %c0_42 = arith.constant 0 : index
    %c0_43 = arith.constant 0 : index
    %98 = vector.load %arg9[%c0_42, %c0_43] : memref<1x128xf32, #tpu.memory_space<vmem>>, vector<1x128xf32>
    %99 = tpu.iota {dimensions = array<i32: 1>} : vector<8x128xi32>
    %c64_i32_44 = arith.constant 64 : i32
    %100 = vector.broadcast %c64_i32_44 : i32 to vector<8x128xi32>
    %101 = arith.cmpi slt, %99, %100 : vector<8x128xi32>
    %cst_45 = arith.constant 0x7F800000 : f32
    %102 = vector.broadcast %cst_45 : f32 to vector<8x128xf32>
    %103 = arith.select %101, %95, %102 : vector<8x128xi1>, vector<8x128xf32>
    %104 = vector.shape_cast %103 : vector<8x128xf32> to vector<1x8x128xf32>
    %cst_46 = arith.constant dense<0x7F800000> : vector<1xf32>
    %105 = vector.multi_reduction <minimumf>, %104, %cst_46 [1, 2] : vector<1x8x128xf32> to vector<1xf32>
    %106 = vector.shape_cast %105 : vector<1xf32> to vector<1x1x1xf32>
    %107 = vector.extract %106[0, 0, 0] : f32 from vector<1x1x1xf32>
    %cst_47 = arith.constant 0xFF800000 : f32
    %108 = vector.broadcast %cst_47 : f32 to vector<8x128xf32>
    %109 = arith.select %101, %95, %108 : vector<8x128xi1>, vector<8x128xf32>
    %110 = vector.shape_cast %109 : vector<8x128xf32> to vector<1x8x128xf32>
    %cst_48 = arith.constant dense<0xFF800000> : vector<1xf32>
    %111 = vector.multi_reduction <maximumf>, %110, %cst_48 [1, 2] : vector<1x8x128xf32> to vector<1xf32>
    %112 = vector.shape_cast %111 : vector<1xf32> to vector<1x1x1xf32>
    %113 = vector.extract %112[0, 0, 0] : f32 from vector<1x1x1xf32>
    %114 = vector.broadcast %107 : f32 to vector<8x128xf32>
    %115 = arith.subf %95, %114 : vector<8x128xf32>
    %cst_49 = arith.constant 2.000000e+00 : f32
    %116 = vector.broadcast %cst_49 : f32 to vector<8x128xf32>
    %117 = arith.mulf %116, %115 : vector<8x128xf32>
    %118 = arith.subf %113, %107 : f32
    %119 = vector.broadcast %118 : f32 to vector<8x128xf32>
    %120 = arith.divf %117, %119 : vector<8x128xf32>
    %cst_50 = arith.constant 1.000000e+00 : f32
    %121 = vector.broadcast %cst_50 : f32 to vector<8x128xf32>
    %122 = arith.subf %120, %121 : vector<8x128xf32>
    %cst_51 = arith.constant 1.000000e+00 : f32
    %123 = vector.broadcast %cst_51 : f32 to vector<8x128xf32>
    %124 = arith.addf %122, %123 : vector<8x128xf32>
    %cst_52 = arith.constant 5.000000e-01 : f32
    %125 = vector.broadcast %cst_52 : f32 to vector<8x128xf32>
    %126 = arith.mulf %124, %125 : vector<8x128xf32>
    %cst_53 = arith.constant 1.999900e+04 : f32
    %127 = vector.broadcast %cst_53 : f32 to vector<8x128xf32>
    %128 = arith.mulf %126, %127 : vector<8x128xf32>
    %129 = math.floor %128 : vector<8x128xf32>
    %cst_54 = arith.constant 1.000050e-04 : f32
    %130 = vector.broadcast %cst_54 : f32 to vector<8x128xf32>
    %131 = arith.mulf %129, %130 : vector<8x128xf32>
    %cst_55 = arith.constant -1.000000e+00 : f32
    %132 = vector.broadcast %cst_55 : f32 to vector<8x128xf32>
    %133 = arith.addf %132, %131 : vector<8x128xf32>
    %cst_56 = arith.constant 2.000000e+00 : f32
    %134 = vector.broadcast %cst_56 : f32 to vector<8x128xf32>
    %135 = arith.mulf %134, %133 : vector<8x128xf32>
    %136 = arith.mulf %135, %133 : vector<8x128xf32>
    %cst_57 = arith.constant 1.000000e+00 : f32
    %137 = vector.broadcast %cst_57 : f32 to vector<8x128xf32>
    %138 = arith.subf %136, %137 : vector<8x128xf32>
    %cst_58 = arith.constant 2.000000e+00 : f32
    %139 = vector.broadcast %cst_58 : f32 to vector<8x128xf32>
    %140 = arith.mulf %139, %133 : vector<8x128xf32>
    %141 = arith.mulf %140, %138 : vector<8x128xf32>
    %142 = arith.subf %141, %133 : vector<8x128xf32>
    %143 = arith.negf %95 : vector<8x128xf32>
    %144 = math.exp %143 : vector<8x128xf32>
    %cst_59 = arith.constant 1.000000e+00 : f32
    %145 = vector.broadcast %cst_59 : f32 to vector<8x128xf32>
    %146 = arith.addf %145, %144 : vector<8x128xf32>
    %147 = arith.divf %145, %146 : vector<8x128xf32>
    %148 = arith.mulf %95, %147 : vector<8x128xf32>
    %c0_60 = arith.constant 0 : index
    %c0_61 = arith.constant 0 : index
    %149 = vector.load %arg11[%c0_60, %c0_61] : memref<8x512xf32, #tpu.memory_space<vmem>>, vector<8x128xf32>
    tpu.vector_store %arg11[%c0_60, %c0_61], %148 {strides = array<i32>} : memref<8x512xf32, #tpu.memory_space<vmem>>, vector<8x128xf32>,
    %c0_62 = arith.constant 0 : index
    %c128_63 = arith.constant 128 : index
    %150 = vector.load %arg11[%c0_62, %c128_63] : memref<8x512xf32, #tpu.memory_space<vmem>>, vector<8x128xf32>
    tpu.vector_store %arg11[%c0_62, %c128_63], %133 {strides = array<i32>} : memref<8x512xf32, #tpu.memory_space<vmem>>, vector<8x128xf32>,
    %c0_64 = arith.constant 0 : index
    %c256_65 = arith.constant 256 : index
    %151 = vector.load %arg11[%c0_64, %c256_65] : memref<8x512xf32, #tpu.memory_space<vmem>>, vector<8x128xf32>
    tpu.vector_store %arg11[%c0_64, %c256_65], %138 {strides = array<i32>} : memref<8x512xf32, #tpu.memory_space<vmem>>, vector<8x128xf32>,
    %c0_66 = arith.constant 0 : index
    %c384_67 = arith.constant 384 : index
    %152 = vector.load %arg11[%c0_66, %c384_67] : memref<8x512xf32, #tpu.memory_space<vmem>>, vector<8x128xf32>
    tpu.vector_store %arg11[%c0_66, %c384_67], %142 {strides = array<i32>} : memref<8x512xf32, #tpu.memory_space<vmem>>, vector<8x128xf32>,
    %c0_68 = arith.constant 0 : index
    %c0_69 = arith.constant 0 : index
    %153 = vector.load %arg11[%c0_68, %c0_69] : memref<8x512xf32, #tpu.memory_space<vmem>>, vector<8x512xf32>
    %c0_70 = arith.constant 0 : index
    %c0_71 = arith.constant 0 : index
    %154 = vector.load %arg6[%c0_70, %c0_71] : memref<512x128xf32, #tpu.memory_space<vmem>>, vector<512x128xf32>
    %cst_72 = arith.constant dense<0.000000e+00> : vector<8x128xf32>
    %155 = tpu.matmul %153, %154, %cst_72 {dimension_numbers = #tpu.dot_dimension_numbers<[1], [0], [0], [1], [0, 0, 1, 1], [], []>} : vector<8x512xf32>, vector<512x128xf32>, vector<8x128xf32> -> vector<8x128xf32>
    %156 = vector.broadcast %96 : vector<1x128xf32> to vector<8x128xf32>
    %157 = arith.addf %155, %156 : vector<8x128xf32>
    %cst_73 = arith.constant dense<0.000000e+00> : vector<8xf32>
    %158 = vector.multi_reduction <add>, %157, %cst_73 [1] : vector<8x128xf32> to vector<8xf32>
    %159 = vector.shape_cast %158 : vector<8xf32> to vector<8x1xf32>
    %cst_74 = arith.constant 6.250000e-02 : f32
    %160 = vector.broadcast %cst_74 : f32 to vector<8x1xf32>
    %161 = arith.mulf %159, %160 : vector<8x1xf32>
    %162 = tpu.iota {dimensions = array<i32: 1>} : vector<8x128xi32>
    %c16_i32 = arith.constant 16 : i32
    %163 = vector.broadcast %c16_i32 : i32 to vector<8x128xi32>
    %164 = arith.cmpi slt, %162, %163 : vector<8x128xi32>
    %165 = vector.broadcast %161 : vector<8x1xf32> to vector<8x128xf32>
    %166 = arith.subf %157, %165 : vector<8x128xf32>
    %cst_75 = arith.constant 0.000000e+00 : f32
    %167 = vector.broadcast %cst_75 : f32 to vector<8x128xf32>
    %168 = arith.select %164, %166, %167 : vector<8x128xi1>, vector<8x128xf32>
    %169 = arith.mulf %168, %168 : vector<8x128xf32>
    %cst_76 = arith.constant dense<0.000000e+00> : vector<8xf32>
    %170 = vector.multi_reduction <add>, %169, %cst_76 [1] : vector<8x128xf32> to vector<8xf32>
    %171 = vector.shape_cast %170 : vector<8xf32> to vector<8x1xf32>
    %cst_77 = arith.constant 6.250000e-02 : f32
    %172 = vector.broadcast %cst_77 : f32 to vector<8x1xf32>
    %173 = arith.mulf %171, %172 : vector<8x1xf32>
    %174 = vector.broadcast %161 : vector<8x1xf32> to vector<8x128xf32>
    %175 = arith.subf %157, %174 : vector<8x128xf32>
    %cst_78 = arith.constant 9.99999974E-6 : f32
    %176 = vector.broadcast %cst_78 : f32 to vector<8x1xf32>
    %177 = arith.addf %173, %176 : vector<8x1xf32>
    %178 = math.rsqrt %177 : vector<8x1xf32>
    %179 = vector.broadcast %178 : vector<8x1xf32> to vector<8x128xf32>
    %180 = arith.mulf %175, %179 : vector<8x128xf32>
    %181 = vector.broadcast %97 : vector<1x128xf32> to vector<8x128xf32>
    %182 = arith.mulf %180, %181 : vector<8x128xf32>
    %183 = vector.broadcast %98 : vector<1x128xf32> to vector<8x128xf32>
    %184 = arith.addf %182, %183 : vector<8x128xf32>
    %185 = arith.negf %184 : vector<8x128xf32>
    %186 = math.exp %185 : vector<8x128xf32>
    %cst_79 = arith.constant 1.000000e+00 : f32
    %187 = vector.broadcast %cst_79 : f32 to vector<8x128xf32>
    %188 = arith.addf %187, %186 : vector<8x128xf32>
    %189 = arith.divf %187, %188 : vector<8x128xf32>
    %190 = arith.mulf %184, %189 : vector<8x128xf32>
    %c0_80 = arith.constant 0 : index
    %c0_81 = arith.constant 0 : index
    %191 = vector.load %arg10[%c0_80, %c0_81] : memref<8x128xf32, #tpu.memory_space<vmem>>, vector<8x128xf32>
    tpu.vector_store %arg10[%c0_80, %c0_81], %190 {strides = array<i32>} : memref<8x128xf32, #tpu.memory_space<vmem>>, vector<8x128xf32>,
    return
  }
  func.func @transform_0(%arg0: i32) -> (i32, i32) {
    %c0_i32 = arith.constant 0 : i32
    %c0_i32_0 = arith.constant 0 : i32
    %c0_i32_1 = arith.constant 0 : i32
    return %c0_i32, %c0_i32_0 : i32, i32
  }
  func.func @transform_1(%arg0: i32) -> (i32, i32) {
    %c0_i32 = arith.constant 0 : i32
    %c0_i32_0 = arith.constant 0 : i32
    %c0_i32_1 = arith.constant 0 : i32
    return %c0_i32, %c0_i32_0 : i32, i32
  }
  func.func @transform_2(%arg0: i32) -> (i32, i32) {
    %c0_i32 = arith.constant 0 : i32
    %c0_i32_0 = arith.constant 0 : i32
    %c0_i32_1 = arith.constant 0 : i32
    return %c0_i32, %c0_i32_0 : i32, i32
  }
  func.func @transform_3(%arg0: i32) -> (i32, i32) {
    %c0_i32 = arith.constant 0 : i32
    %c0_i32_0 = arith.constant 0 : i32
    %c0_i32_1 = arith.constant 0 : i32
    return %c0_i32, %c0_i32_0 : i32, i32
  }
  func.func @transform_4(%arg0: i32) -> (i32, i32) {
    %c0_i32 = arith.constant 0 : i32
    %c0_i32_0 = arith.constant 0 : i32
    %c0_i32_1 = arith.constant 0 : i32
    return %c0_i32, %c0_i32_0 : i32, i32
  }
  func.func @transform_5(%arg0: i32) -> (i32, i32) {
    %c0_i32 = arith.constant 0 : i32
    %c0_i32_0 = arith.constant 0 : i32
    %c0_i32_1 = arith.constant 0 : i32
    return %c0_i32, %c0_i32_0 : i32, i32
  }
  func.func @transform_6(%arg0: i32) -> (i32, i32) {
    %c0_i32 = arith.constant 0 : i32
    %c0_i32_0 = arith.constant 0 : i32
    %c0_i32_1 = arith.constant 0 : i32
    return %c0_i32, %c0_i32_0 : i32, i32
  }
  func.func @transform_7(%arg0: i32) -> (i32, i32) {
    %c0_i32 = arith.constant 0 : i32
    %c0_i32_0 = arith.constant 0 : i32
    %c0_i32_1 = arith.constant 0 : i32
    return %c0_i32, %c0_i32_0 : i32, i32
  }
  func.func @transform_8(%arg0: i32) -> (i32, i32) {
    %c0_i32 = arith.constant 0 : i32
    %c0_i32_0 = arith.constant 0 : i32
    %c0_i32_1 = arith.constant 0 : i32
    return %c0_i32, %c0_i32_0 : i32, i32
  }
  func.func @transform_9(%arg0: i32) -> (i32, i32) {
    %c0_i32 = arith.constant 0 : i32
    %c0_i32_0 = arith.constant 0 : i32
    %c0_i32_1 = arith.constant 0 : i32
    return %c0_i32, %c0_i32_0 : i32, i32
  }
}

</mosaic_0001>

<bundles_post_ra>
// kernel: mlkan_forward.1
= control target key start
LH: loop header
LB: loop body
LE: loop exit
PB: predicated region body
PF: predicated region fallthrough
CT: control target
= control target key end

     0   :  { %14 = vsyncpa [#allocation4], 0  ;;  %s919_s0 = inlined_call_operand.vmem [shape: f32[8,128], index: 0, kind: input, shape index: {}]   ;;  %s920_s1 = inlined_call_operand.hbm [shape: f32[512,128], index: 1, kind: input, shape index: {}]   ;;  %s921_s2 = inlined_call_operand.vmem [shape: f32[1,128], index: 2, kind: input, shape index: {}]   ;;  %s922_s3 = inlined_call_operand.vmem [shape: f32[1,128], index: 3, kind: input, shape index: {}]   ;;  %s923_s4 = inlined_call_operand.vmem [shape: f32[1,128], index: 4, kind: input, shape index: {}]   ;;  %s924_s5 = inlined_call_operand.hbm [shape: f32[512,128], index: 5, kind: input, shape index: {}]   ;;  %s925_s6 = inlined_call_operand.vmem [shape: f32[1,128], index: 6, kind: input, shape index: {}]   ;;  %s926_s7 = inlined_call_operand.vmem [shape: f32[1,128], index: 7, kind: input, shape index: {}]   ;;  %s927_s8 = inlined_call_operand.vmem [shape: f32[1,128], index: 8, kind: input, shape index: {}]   ;;  %s928_s9 = inlined_call_operand.hbm [shape: f32[8,128], index: 9, kind: output, shape index: {}]  }
   0x1   :  { %15 = vsyncpa [#allocation7], 0 }
   0x2   :  { %16 = vsyncpa [#allocation5], 0  ;;  %s23_s11 = sshll.u32 %s920_s1, 4  ;;  %s777_s12 = smov [#allocation3]   ;;  %s24_s11 = int_to_ptr.hbm [resolvable:$true] %s23_s11 }
   0x3   :  { %s25_s13 = sshll.u32 %s777_s12, 4  ;;  %s42_s16 = sshll.u32 %s924_s5, 4  ;;  %s26_s13 = int_to_ptr.vmem [resolvable:$true] %s25_s13  ;;  %s43_s16 = int_to_ptr.hbm [resolvable:$true] %s42_s16 }
   0x4   :  { %s778_s17 = smov 128   ;;  %s779_s18 = smov 8  }
   0x5   :  { %31 = dma.hbm_to_vmem [thread:$0]  %s24_s11, 8192, %s26_s13, [#allocation4], %s778_s17, %s778_s17, %s779_s18  }
   0x6   :  { %s780_s19 = smov [#allocation6]  }
   0x7   :  { %s44_s20 = sshll.u32 %s780_s19, 4  ;;  %s45_s20 = int_to_ptr.vmem [resolvable:$true] %s44_s20 }
   0x8   :  { %50 = dma.hbm_to_vmem [thread:$0]  %s43_s16, 8192, %s45_s20, [#allocation7], %s778_s17, %s778_s17, %s779_s18  }
   0x9   :  { %771 = dma.done.wait [#allocation4], 8192  }
   0xa   :  { %772 = vsyncadd [#allocation4], 4294959104 }
   0xb   :  { %773 = dma.done.wait [#allocation7], 8192  }
   0xc   :  { %774 = vsyncadd [#allocation7], 4294959104  ;;  %v69_v0 = vlaneseq  ;;  %v844_v2 = vld [vmem:[%s919_s0] sm:$0xff]  ;;  %v167_v20 = vld [vmem:[#allocation3 + $0x78] sm:$0xff]  ;;  %s637_s15 = sshll.u32 %s928_s9, 4  ;;  %s638_s15 = int_to_ptr.hbm [resolvable:$true] %s637_s15 }
   0xd   :  { %v650_v19 = vmul.f32 -1.442695, %v844_v2  ;;  %219 = vmatpush.msra.mxu0 %v167_v20  ;;  %v166_v22 = vld [vmem:[#allocation3 + $0x70] sm:$0xff]  ;;  %v183_v23 = vld [vmem:[#allocation3 + $0xf8] sm:$0xff]  ;;  %v165_v25 = vld [vmem:[#allocation3 + $0x68] sm:$0xff] }
   0xe   :  { %v838_v1 = vand.u32 127, %v69_v0  ;;  %239 = vmatpush.msra.mxu1 %v183_v23  ;;  %v182_v26 = vld [vmem:[#allocation3 + $0xf0] sm:$0xff]  ;;  %v164_v27 = vld [vmem:[#allocation3 + $0x60] sm:$0xff]  ;;  %v181_v28 = vld [vmem:[#allocation3 + $0xe8] sm:$0xff] }
   0xf   :  { %675 = vpow2.f32 %v650_v19  ;;  %220 = vmatpush.msra.mxu0 %v166_v22  ;;  %v163_v29 = vld [vmem:[#allocation3 + $0x58] sm:$0xff]  ;;  %v180_v30 = vld [vmem:[#allocation3 + $0xe0] sm:$0xff]  ;;  %v162_v32 = vld [vmem:[#allocation3 + $0x50] sm:$0xff] }
  0x10   :  { %vm71_vm0 = vcmp.lt.s32.totalorder %v838_v1, 32  ;;  %240 = vmatpush.msra.mxu1 %v182_v26  ;;  %v199_v31 = vld [vmem:[#allocation3 + $0x178] sm:$0xff]  ;;  %v198_v34 = vld [vmem:[#allocation3 + $0x170] sm:$0xff]  ;;  %v161_v35 = vld [vmem:[#allocation3 + $0x48] sm:$0xff]  ;;  %vm302_vm9 = vcmp.lt.s32.totalorder %v838_v1, 64 }
  0x11   :  { %v72_v3 = vsel %vm71_vm0, %v844_v2, inf  ;;  %v82_v4 = vsel %vm71_vm0, %v844_v2, -inf  ;;  %221 = vmatpush.msra.mxu0 %v165_v25  ;;  %259 = vmatpush.msra.mxu2 %v199_v31  ;;  %v179_v33 = vld [vmem:[#allocation3 + $0xd8] sm:$0xff]  ;;  %v178_v36 = vld [vmem:[#allocation3 + $0xd0] sm:$0xff]  ;;  %v197_v37 = vld [vmem:[#allocation3 + $0x168] sm:$0xff] }
  0x12   :  { %73 = vmin.xlane.f32.xlu0 %v72_v3  ;;  %241 = vmatpush.msra.mxu1 %v181_v28  ;;  %v215_v38 = vld [vmem:[#allocation3 + $0x1f8] sm:$0xff]  ;;  %v160_v40 = vld [vmem:[#allocation3 + $0x40] sm:$0xff]  ;;  %v177_v41 = vld [vmem:[#allocation3 + $0xc8] sm:$0xff] }
  0x13   :  { %222 = vmatpush.msra.mxu0 %v164_v27  ;;  %260 = vmatpush.msra.mxu2 %v198_v34  ;;  %v196_v42 = vld [vmem:[#allocation3 + $0x160] sm:$0xff]  ;;  %v214_v43 = vld [vmem:[#allocation3 + $0x1f0] sm:$0xff]  ;;  %v159_v44 = vld [vmem:[#allocation3 + $0x38] sm:$0xff] }
  0x14   :  { %242 = vmatpush.msra.mxu1 %v180_v30  ;;  %279 = vmatpush.msra.mxu3 %v215_v38  ;;  %v176_v45 = vld [vmem:[#allocation3 + $0xc0] sm:$0xff]  ;;  %v195_v46 = vld [vmem:[#allocation3 + $0x158] sm:$0xff]  ;;  %v213_v47 = vld [vmem:[#allocation3 + $0x1e8] sm:$0xff] }
  0x15   :  { %v676_v21 = vpop.eup %675  ;;  %223 = vmatpush.msra.mxu0 %v163_v29  ;;  %261 = vmatpush.msra.mxu2 %v197_v37  ;;  %v158_v48 = vld [vmem:[#allocation3 + $0x30] sm:$0xff]  ;;  %v175_v49 = vld [vmem:[#allocation3 + $0xb8] sm:$0xff]  ;;  %v212_v52 = vld [vmem:[#allocation3 + $0x1e0] sm:$0xff] }
  0x16   :  { %v849_v24 = vadd.f32 1.0, %v676_v21  ;;  %243 = vmatpush.msra.mxu1 %v179_v33  ;;  %280 = vmatpush.msra.mxu3 %v214_v43  ;;  %v194_v51 = vld [vmem:[#allocation3 + $0x150] sm:$0xff]  ;;  %v157_v53 = vld [vmem:[#allocation3 + $0x28] sm:$0xff]  ;;  %v211_v56 = vld [vmem:[#allocation3 + $0x1d8] sm:$0xff] }
  0x17   :  { %224 = vmatpush.msra.mxu0 %v162_v32  ;;  %262 = vmatpush.msra.mxu2 %v196_v42  ;;  %v174_v54 = vld [vmem:[#allocation3 + $0xb0] sm:$0xff]  ;;  %v193_v55 = vld [vmem:[#allocation3 + $0x148] sm:$0xff]  ;;  %v156_v58 = vld [vmem:[#allocation3 + $0x20] sm:$0xff] }
  0x18   :  { %677 = vrcp.f32 %v849_v24  ;;  %244 = vmatpush.msra.mxu1 %v178_v36  ;;  %281 = vmatpush.msra.mxu3 %v213_v47  ;;  %v173_v59 = vld [vmem:[#allocation3 + $0xa8] sm:$0xff]  ;;  %v139_v60 = vand.u32 2147483648, %v849_v24  ;;  %v192_v61 = vld [vmem:[#allocation3 + $0x140] sm:$0xff]  ;;  %v210_v62 = vld [vmem:[#allocation3 + $0x1d0] sm:$0xff]  ;;  %v137_v0 = vand.u32 2147483647, %v849_v24  ;;  %vm133_vm1 = vweird.f32 %v849_v24 }
  0x19   :  { %225 = vmatpush.msra.mxu0 %v161_v35  ;;  %263 = vmatpush.msra.mxu2 %v195_v46  ;;  %v155_v3 = vld [vmem:[#allocation3 + $0x18] sm:$0xff]  ;;  %v152_v19 = vld [vmem:[#allocation3] sm:$0xff]  ;;  %v169_v20 = vld [vmem:[#allocation3 + $0x88] sm:$0xff] }
  0x1a   :  { %83 = vmax.xlane.f32.xlu0 %v82_v4  ;;  %245 = vmatpush.msra.mxu1 %v177_v41  ;;  %v172_v4 = vld [vmem:[#allocation3 + $0xa0] sm:$0xff]  ;;  %vm862_vm3 = vcmp.eq.f32.partialorder %v137_v0, 8.507059e+37  ;;  %v206_v23 = vld [vmem:[#allocation3 + $0x1b0] sm:$0xff]  ;;  %v187_v26 = vld [vmem:[#allocation3 + $0x118] sm:$0xff] }
  0x1b   :  { %226 = vmatpush.msra.mxu0 %v160_v40  ;;  %264 = vmatpush.msra.mxu2 %v194_v51  ;;  %v188_v22 = vld [vmem:[#allocation3 + $0x120] sm:$0xff]  ;;  %v205_v27 = vld [vmem:[#allocation3 + $0x1a8] sm:$0xff]  ;;  %v186_v29 = vld [vmem:[#allocation3 + $0x110] sm:$0xff] }
  0x1c   :  { %246 = vmatpush.msra.mxu1 %v176_v45  ;;  %282 = vmatpush.msra.mxu3 %v212_v52  ;;  %v168_v25 = vld [vmem:[#allocation3 + $0x80] sm:$0xff]  ;;  %v185_v31 = vld [vmem:[#allocation3 + $0x108] sm:$0xff]  ;;  %v203_v32 = vld [vmem:[#allocation3 + $0x198] sm:$0xff] }
  0x1d   :  { %227 = vmatpush.msra.mxu0 %v159_v44  ;;  %265 = vmatpush.msra.mxu2 %v193_v55  ;;  %v204_v30 = vld [vmem:[#allocation3 + $0x1a0] sm:$0xff]  ;;  %v202_v34 = vld [vmem:[#allocation3 + $0x190] sm:$0xff]  ;;  %v201_v37 = vld [vmem:[#allocation3 + $0x188] sm:$0xff] }
  0x1e   :  { %v852_v39 = vpop.eup %677  ;;  %247 = vmatpush.msra.mxu1 %v175_v49  ;;  %283 = vmatpush.msra.mxu3 %v211_v56  ;;  %v184_v33 = vld [vmem:[#allocation3 + $0x100] sm:$0xff] }
  0x1f   :  { %v129_v50 = vmul.f32 %v852_v39, %v849_v24  ;;  %228 = vmatpush.msra.mxu0 %v158_v48  ;;  %vm134_vm2 = vweird.f32 %v852_v39  ;;  %266 = vmatpush.msra.mxu2 %v192_v61 }
  0x20   :  { %248 = vmatpush.msra.mxu1 %v174_v54  ;;  %284 = vmatpush.msra.mxu3 %v210_v62  ;;  %vm135_vm4 = vmor %vm133_vm1, %vm134_vm2  ;;  %v669_v62 = vld [vmem:[%s921_s2] ss:$0 sm:$0xff] }
  0x21   :  { %v130_v57 = vsub.f32 1.0, %v129_v50  ;;  %229 = vmatpush.msra.mxu0 %v157_v53 }
  0x22   :  { %249 = vmatpush.msra.mxu1 %v173_v59 }
  0x23   :  { %v131_v63 = vmul.f32 %v852_v39, %v130_v57  ;;  %230 = vmatpush.msra.mxu0 %v156_v58 }
  0x24   :  { %250 = vmatpush.msra.mxu1 %v172_v4 }
  0x25   :  { %231 = vmatpush.msra.mxu0 %v155_v3 }
  0x85   :  { %v74_v5 = vpop.xlane.xlu0 %73 }
  0x86   :  { %v75_v6 = vrot.slane %v74_v5, 4 }
  0x88   :  { %v76_v7 = vmin.f32 %v74_v5, %v75_v6  ;;  %v191_v5 = vld [vmem:[#allocation3 + $0x138] sm:$0xff]  ;;  %v209_v6 = vld [vmem:[#allocation3 + $0x1c8] sm:$0xff] }
  0x89   :  { %267 = vmatpush.msra.mxu2 %v191_v5  ;;  %285 = vmatpush.msra.mxu3 %v209_v6 }
  0x8a   :  { %v77_v8 = vrot.slane %v76_v7, 2 }
  0x8c   :  { %v78_v9 = vmin.f32 %v76_v7, %v77_v8  ;;  %v132_v7 = vadd.f32 %v852_v39, %v131_v63  ;;  %v154_v8 = vld [vmem:[#allocation3 + $0x10] sm:$0xff] }
  0x8d   :  { %v84_v10 = vpop.xlane.xlu0 %83  ;;  %232 = vmatpush.msra.mxu0 %v154_v8 }
  0x8e   :  { %v85_v11 = vrot.slane %v84_v10, 4  ;;  %v79_v12 = vrot.slane %v78_v9, 1 }
  0x90   :  { %v86_v13 = vmax.f32 %v84_v10, %v85_v11  ;;  %v80_v14 = vmin.f32 %v78_v9, %v79_v12  ;;  %v171_v9 = vld [vmem:[#allocation3 + $0x98] sm:$0xff]  ;;  %v140_v10 = vor.u32 1.1754944e-38, %v139_v60  ;;  %v190_v11 = vld [vmem:[#allocation3 + $0x130] sm:$0xff]  ;;  %v208_v12 = vld [vmem:[#allocation3 + $0x1c0] sm:$0xff] }
  0x91   :  { %251 = vmatpush.msra.mxu1 %v171_v9  ;;  %268 = vmatpush.msra.mxu2 %v190_v11 }
  0x92   :  { %v87_v15 = vrot.slane %v86_v13, 2  ;;  %656 = vpush %v80_v14  ;;  %v153_v14 = vld [vmem:[#allocation3 + $0x8] sm:$0xff]  ;;  %286 = vmatpush.msra.mxu3 %v208_v12 }
  0x93   :  { %233 = vmatpush.msra.mxu0 %v153_v14 }
  0x94   :  { %v88_v16 = vmax.f32 %v86_v13, %v87_v15  ;;  %v170_v15 = vld [vmem:[#allocation3 + $0x90] sm:$0xff] }
  0x95   :  { %252 = vmatpush.msra.mxu1 %v170_v15  ;;  %234 = vmatpush.msra.mxu0 %v152_v19 }
  0x96   :  { %v89_v17 = vrot.slane %v88_v16, 1 }
  0x97   :  { %253 = vmatpush.msra.mxu1 %v169_v20 }
  0x98   :  { %v90_v18 = vmax.f32 %v88_v16, %v89_v17  ;;  %v189_v16 = vld [vmem:[#allocation3 + $0x128] sm:$0xff]  ;;  %v207_v17 = vld [vmem:[#allocation3 + $0x1b8] sm:$0xff] }
  0x99   :  { %269 = vmatpush.msra.mxu2 %v189_v16  ;;  %287 = vmatpush.msra.mxu3 %v207_v17  ;;  %v447_v17 = vld [vmem:[#allocation6 + $0x78] sm:$0xff] }
  0x9a   :  { %658 = vpush %v90_v18  ;;  %v136_v18 = vsel %vm135_vm4, %v852_v39, %v132_v7  ;;  %254 = vmatpush.msra.mxu1 %v168_v25  ;;  %v200_v39 = vld [vmem:[#allocation3 + $0x180] sm:$0xff]  ;;  %499 = vmatpush.msrb.mxu0 %v447_v17 }
  0x9b   :  { %v141_v21 = vsel %vm862_vm3, %v140_v10, %v136_v18  ;;  %270 = vmatpush.msra.mxu2 %v188_v22  ;;  %288 = vmatpush.msra.mxu3 %v206_v23  ;;  %v446_v18 = vld [vmem:[#allocation6 + $0x70] sm:$0xff]  ;;  %v670_v25 = vld [vmem:[%s922_s3] ss:$0 sm:$0xff] }
  0x9c   :  { %v143_v24 = vmul.f32 %v141_v21, %v844_v2  ;;  %500 = vmatpush.msrb.mxu0 %v446_v18 }
  0x9d   :  { %271 = vmatpush.msra.mxu2 %v187_v26  ;;  %289 = vmatpush.msra.mxu3 %v205_v27  ;;  %v671_v27 = vld [vmem:[%s923_s4] ss:$0 sm:$0xff] }
  0x9e   :  { %235 = vmatmul.f32.vlgmr.msra.gmra.mxu0 %v143_v24 }
  0x9f   :  { %272 = vmatpush.msra.mxu2 %v186_v29  ;;  %290 = vmatpush.msra.mxu3 %v204_v30 }
  0xa1   :  { %273 = vmatpush.msra.mxu2 %v185_v31  ;;  %291 = vmatpush.msra.mxu3 %v203_v32  ;;  %v445_v31 = vld [vmem:[#allocation6 + $0x68] sm:$0xff]  ;;  %v444_v32 = vld [vmem:[#allocation6 + $0x60] sm:$0xff] }
  0xa2   :  { %501 = vmatpush.msrb.mxu0 %v445_v31  ;;  %v459_v31 = vld [vmem:[#allocation6 + $0xd8] sm:$0xff] }
  0xa3   :  { %274 = vmatpush.msra.mxu2 %v184_v33  ;;  %292 = vmatpush.msra.mxu3 %v202_v34  ;;  %v443_v34 = vld [vmem:[#allocation6 + $0x58] sm:$0xff] }
  0xa4   :  { %502 = vmatpush.msrb.mxu0 %v444_v32  ;;  %v478_v32 = vld [vmem:[#allocation6 + $0x170] sm:$0xff] }
  0xa5   :  { %293 = vmatpush.msra.mxu3 %v201_v37  ;;  %v440_v37 = vld [vmem:[#allocation6 + $0x40] sm:$0xff] }
  0xa6   :  { %503 = vmatpush.msrb.mxu0 %v443_v34  ;;  %v477_v34 = vld [vmem:[#allocation6 + $0x168] sm:$0xff] }
  0xa7   :  { %294 = vmatpush.msra.mxu3 %v200_v39 }
  0xc3   :  { %s871_s0 = spop %656 }
  0xc4   :  { %v92_v38 = vstv %s871_s0 }
  0xc5   :  { %v93_v42 = vsub.f32 %v844_v2, %v92_v38 }
  0xc7   :  { %v94_v47 = vmul.f32 2.0, %v93_v42  ;;  %v437_v42 = vld [vmem:[#allocation6 + $0x28] sm:$0xff] }
  0xcb   :  { %s659_s5 = spop %658 }
  0xcc   :  { %s95_s22 = ssub.f32 %s659_s5, %s871_s0 }
  0xce   :  { %v96_v28 = vstv %s95_s22 }
  0xcf   :  { %679 = vrcp.f32 %v96_v28  ;;  %v108_v41 = vand.u32 2147483648, %v96_v28  ;;  %v106_v44 = vand.u32 2147483647, %v96_v28  ;;  %vm102_vm6 = vweird.f32 %v96_v28 }
  0xd1   :  { %v109_v46 = vor.u32 1.1754944e-38, %v108_v41  ;;  %vm107_vm8 = vcmp.eq.f32.partialorder %v106_v44, 8.507059e+37  ;;  %v438_v41 = vld [vmem:[#allocation6 + $0x30] sm:$0xff] }
  0xd5   :  { %v680_v35 = vpop.eup %679 }
  0xd6   :  { %v98_v36 = vmul.f32 %v680_v35, %v96_v28  ;;  %vm103_vm5 = vweird.f32 %v680_v35 }
  0xd7   :  { %vm104_vm7 = vmor %vm102_vm6, %vm103_vm5 }
  0xd8   :  { %v99_v40 = vsub.f32 1.0, %v98_v36  ;;  %v441_v36 = vld [vmem:[#allocation6 + $0x48] sm:$0xff] }
  0xda   :  { %v100_v43 = vmul.f32 %v680_v35, %v99_v40  ;;  %v439_v40 = vld [vmem:[#allocation6 + $0x38] sm:$0xff] }
  0xdc   :  { %v101_v45 = vadd.f32 %v680_v35, %v100_v43  ;;  %v436_v43 = vld [vmem:[#allocation6 + $0x20] sm:$0xff] }
  0xde   :  { %v105_v48 = vsel %vm104_vm7, %v680_v35, %v101_v45  ;;  %v442_v35 = vld [vmem:[#allocation6 + $0x50] sm:$0xff]  ;;  %v435_v45 = vld [vmem:[#allocation6 + $0x18] sm:$0xff] }
  0xdf   :  { %v110_v49 = vsel %vm107_vm8, %v109_v46, %v105_v48  ;;  %504 = vmatpush.msrb.mxu0 %v442_v35  ;;  %v495_v35 = vld [vmem:[#allocation6 + $0x1f8] sm:$0xff] }
  0xe0   :  { %v111_v50 = vmul.f32 %v110_v49, %v94_v47  ;;  %v434_v47 = vld [vmem:[#allocation6 + $0x10] sm:$0xff]  ;;  %559 = vmatpush.msrb.mxu3 %v495_v35 }
  0xe1   :  { %505 = vmatpush.msrb.mxu0 %v441_v36  ;;  %v457_v36 = vld [vmem:[#allocation6 + $0xc8] sm:$0xff] }
  0xe2   :  { %v648_v51 = vadd.f32 -1.0, %v111_v50  ;;  %v433_v50 = vld [vmem:[#allocation6 + $0x8] sm:$0xff] }
  0xe3   :  { %506 = vmatpush.msrb.mxu0 %v440_v37  ;;  %v476_v37 = vld [vmem:[#allocation6 + $0x160] sm:$0xff] }
  0xe4   :  { %v113_v52 = vadd.f32 1.0, %v648_v51 }
  0xe5   :  { %507 = vmatpush.msrb.mxu0 %v439_v40  ;;  %v475_v40 = vld [vmem:[#allocation6 + $0x158] sm:$0xff] }
  0xe6   :  { %v114_v53 = vmul.f32 0.5, %v113_v52 }
  0xe7   :  { %508 = vmatpush.msrb.mxu0 %v438_v41  ;;  %v493_v41 = vld [vmem:[#allocation6 + $0x1e8] sm:$0xff] }
  0xe8   :  { %v115_v54 = vmul.f32 19999.0, %v114_v53  ;;  %v432_v53 = vld [vmem:[#allocation6] sm:$0xff] }
  0xe9   :  { %509 = vmatpush.msrb.mxu0 %v437_v42  ;;  %v455_v42 = vld [vmem:[#allocation6 + $0xb8] sm:$0xff] }
  0xea   :  { %v116_v55 = vfloor.f32 %v115_v54 }
  0xeb   :  { %510 = vmatpush.msrb.mxu0 %v436_v43  ;;  %v474_v43 = vld [vmem:[#allocation6 + $0x150] sm:$0xff] }
  0xec   :  { %v117_v56 = vmul.f32 0.000100005, %v116_v55 }
  0xed   :  { %511 = vmatpush.msrb.mxu0 %v435_v45  ;;  %v454_v45 = vld [vmem:[#allocation6 + $0xb0] sm:$0xff] }
  0xee   :  { %v118_v2 = vadd.f32 -1.0, %v117_v56 }
  0xef   :  { %512 = vmatpush.msrb.mxu0 %v434_v47  ;;  %v491_v47 = vld [vmem:[#allocation6 + $0x1d8] sm:$0xff] }
  0xf0   :  { %255 = vmatmul.f32.vlgmr.msra.gmra.mxu1 %v118_v2  ;;  %v119_v57 = vmul.f32 2.0, %v118_v2 }
  0xf1   :  { %513 = vmatpush.msrb.mxu0 %v433_v50  ;;  %v490_v50 = vld [vmem:[#allocation6 + $0x1d0] sm:$0xff] }
  0xf2   :  { %v120_v58 = vmul.f32 %v119_v57, %v118_v2 }
  0xf3   :  { %514 = vmatpush.msrb.mxu0 %v432_v53  ;;  %v489_v53 = vld [vmem:[#allocation6 + $0x1c8] sm:$0xff] }
  0xf4   :  { %v649_v59 = vadd.f32 -1.0, %v120_v58 }
  0xf6   :  { %275 = vmatmul.f32.vlgmr.msra.gmra.mxu2 %v649_v59  ;;  %v122_v60 = vmul.f32 %v649_v59, %v119_v57 }
  0xf8   :  { %v123_v61 = vsub.f32 %v122_v60, %v118_v2 }
  0xfa   :  { %295 = vmatmul.f32.vlgmr.msra.gmra.mxu3 %v123_v61 }
 0x11b   :  { %v236_v63 = vpop.f32.mrf.mxu0 }
 0x11c   :  { %v237_v0 = vadd.f32 %v669_v62, %v236_v63 }
 0x16d   :  { %v256_v3 = vpop.f32.mrf.mxu1 }
 0x16e   :  { %v257_v5 = vadd.f32 %v256_v3, %v237_v0 }
 0x179   :  { %v276_v4 = vpop.f32.mrf.mxu2 }
 0x17a   :  { %v277_v6 = vadd.f32 %v276_v4, %v257_v5 }
 0x17d   :  { %v296_v7 = vpop.f32.mrf.mxu3 }
 0x17e   :  { %v297_v8 = vadd.f32 %v296_v7, %v277_v6 }
 0x180   :  { %299 = vadd.xlane.f32.xlu1 %v297_v8 }
 0x1f3   :  { %v300_v9 = vpop.xlane.xlu1 %299 }
 0x1f4   :  { %v301_v10 = vmul.f32 0.015625, %v300_v9 }
 0x1f6   :  { %v303_v11 = vsub.f32 %v297_v8, %v301_v10 }
 0x1f8   :  { %v304_v12 = vsel %vm302_vm9, %v303_v11, 0.0 }
 0x1f9   :  { %v305_v13 = vmul.f32 %v304_v12, %v304_v12 }
 0x1fb   :  { %306 = vadd.xlane.f32.xlu1 %v305_v13 }
 0x26e   :  { %v307_v14 = vpop.xlane.xlu1 %306 }
 0x26f   :  { %v308_v15 = vmul.f32 0.015625, %v307_v14 }
 0x271   :  { %v309_v16 = vadd.f32 1e-05, %v308_v15 }
 0x273   :  { %681 = vrsqrt.f32 %v309_v16  ;;  %vm316_vm11 = vweird.f32 %v309_v16 }
 0x279   :  { %v682_v19 = vpop.eup %681 }
 0x27a   :  { %v311_v20 = vmul.f32 %v682_v19, %v309_v16  ;;  %vm317_vm10 = vweird.f32 %v682_v19 }
 0x27b   :  { %vm318_vm12 = vmor %vm316_vm11, %vm317_vm10 }
 0x27c   :  { %v312_v21 = vmul.f32 %v682_v19, %v311_v20 }
 0x27e   :  { %v313_v22 = vmul.f32 0.5, %v312_v21 }
 0x280   :  { %v314_v23 = vsub.f32 1.5, %v313_v22 }
 0x282   :  { %v315_v24 = vmul.f32 %v682_v19, %v314_v23 }
 0x284   :  { %v319_v26 = vsel %vm318_vm12, %v682_v19, %v315_v24 }
 0x285   :  { %v320_v28 = vmul.f32 %v319_v26, %v303_v11  ;;  %v463_v26 = vld [vmem:[#allocation6 + $0xf8] sm:$0xff] }
 0x286   :  { %519 = vmatpush.msrb.mxu1 %v463_v26 }
 0x287   :  { %v324_v29 = vmul.f32 %v670_v25, %v320_v28  ;;  %v461_v28 = vld [vmem:[#allocation6 + $0xe8] sm:$0xff] }
 0x289   :  { %v328_v30 = vadd.f32 %v671_v27, %v324_v29  ;;  %v462_v27 = vld [vmem:[#allocation6 + $0xf0] sm:$0xff]  ;;  %v460_v29 = vld [vmem:[#allocation6 + $0xe0] sm:$0xff] }
 0x28a   :  { %520 = vmatpush.msrb.mxu1 %v462_v27 }
 0x28b   :  { %v651_v33 = vmul.f32 -1.442695, %v328_v30 }
 0x28c   :  { %521 = vmatpush.msrb.mxu1 %v461_v28 }
 0x28d   :  { %683 = vpow2.f32 %v651_v33  ;;  %v458_v33 = vld [vmem:[#allocation6 + $0xd0] sm:$0xff] }
 0x28e   :  { %522 = vmatpush.msrb.mxu1 %v460_v29 }
 0x290   :  { %523 = vmatpush.msrb.mxu1 %v459_v31 }
 0x292   :  { %524 = vmatpush.msrb.mxu1 %v458_v33 }
 0x293   :  { %v684_v38 = vpop.eup %683 }
 0x294   :  { %v332_v39 = vadd.f32 1.0, %v684_v38  ;;  %v494_v38 = vld [vmem:[#allocation6 + $0x1f0] sm:$0xff]  ;;  %525 = vmatpush.msrb.mxu1 %v457_v36 }
 0x295   :  { %560 = vmatpush.msrb.mxu3 %v494_v38  ;;  %v672_v38 = vld [vmem:[%s925_s6] ss:$0 sm:$0xff] }
 0x296   :  { %685 = vrcp.f32 %v332_v39  ;;  %v344_v49 = vand.u32 2147483648, %v332_v39  ;;  %v342_v52 = vand.u32 2147483647, %v332_v39  ;;  %vm338_vm14 = vweird.f32 %v332_v39 }
 0x297   :  { %561 = vmatpush.msrb.mxu3 %v493_v41 }
 0x298   :  { %v345_v55 = vor.u32 1.1754944e-38, %v344_v49  ;;  %vm343_vm0 = vcmp.eq.f32.partialorder %v342_v52, 8.507059e+37  ;;  %v472_v49 = vld [vmem:[#allocation6 + $0x140] sm:$0xff]  ;;  %v471_v52 = vld [vmem:[#allocation6 + $0x138] sm:$0xff] }
 0x29c   :  { %v686_v44 = vpop.eup %685 }
 0x29d   :  { %v334_v46 = vmul.f32 %v686_v44, %v332_v39  ;;  %vm339_vm13 = vweird.f32 %v686_v44  ;;  %v456_v39 = vld [vmem:[#allocation6 + $0xc0] sm:$0xff] }
 0x29e   :  { %vm340_vm15 = vmor %vm338_vm14, %vm339_vm13  ;;  %526 = vmatpush.msrb.mxu1 %v456_v39 }
 0x29f   :  { %v335_v48 = vsub.f32 1.0, %v334_v46  ;;  %v473_v46 = vld [vmem:[#allocation6 + $0x148] sm:$0xff] }
 0x2a0   :  { %527 = vmatpush.msrb.mxu1 %v455_v42 }
 0x2a1   :  { %v336_v51 = vmul.f32 %v686_v44, %v335_v48  ;;  %v453_v48 = vld [vmem:[#allocation6 + $0xa8] sm:$0xff] }
 0x2a2   :  { %528 = vmatpush.msrb.mxu1 %v454_v45 }
 0x2a3   :  { %v337_v54 = vadd.f32 %v686_v44, %v336_v51  ;;  %v452_v51 = vld [vmem:[#allocation6 + $0xa0] sm:$0xff] }
 0x2a4   :  { %529 = vmatpush.msrb.mxu1 %v453_v48 }
 0x2a5   :  { %v341_v56 = vsel %vm340_vm15, %v686_v44, %v337_v54  ;;  %v492_v44 = vld [vmem:[#allocation6 + $0x1e0] sm:$0xff]  ;;  %v451_v54 = vld [vmem:[#allocation6 + $0x98] sm:$0xff] }
 0x2a6   :  { %v346_v2 = vsel %vm343_vm0, %v345_v55, %v341_v56  ;;  %562 = vmatpush.msrb.mxu3 %v492_v44  ;;  %v470_v55 = vld [vmem:[#allocation6 + $0x130] sm:$0xff]  ;;  %530 = vmatpush.msrb.mxu1 %v452_v51  ;;  %v488_v56 = vld [vmem:[#allocation6 + $0x1c0] sm:$0xff] }
 0x2a7   :  { %v891_v57 = vmul.f32 %v346_v2, %v328_v30  ;;  %v479_v30 = vld [vmem:[#allocation6 + $0x178] sm:$0xff]  ;;  %v450_v2 = vld [vmem:[#allocation6 + $0x90] sm:$0xff] }
 0x2a8   :  { %539 = vmatpush.msrb.mxu2 %v479_v30  ;;  %563 = vmatpush.msrb.mxu3 %v491_v47 }
 0x2a9   :  { %v352_v58 = vsel %vm302_vm9, %v891_v57, inf  ;;  %v654_v59 = vmul.f32 -1.442695, %v891_v57  ;;  %v362_v61 = vsel %vm302_vm9, %v891_v57, -inf  ;;  %531 = vmatpush.msrb.mxu1 %v451_v54  ;;  %vm582_vm9 = vcmp.lt.s32.totalorder %v838_v1, 16 }
 0x2aa   :  { %353 = vmin.xlane.f32.xlu2 %v352_v58  ;;  %540 = vmatpush.msrb.mxu2 %v478_v32  ;;  %v469_v58 = vld [vmem:[#allocation6 + $0x128] sm:$0xff]  ;;  %v673_v1 = vld [vmem:[%s926_s7] ss:$0 sm:$0xff]  ;;  %s781_s7 = smov [#allocation8]  }
 0x2ab   :  { %687 = vpow2.f32 %v654_v59  ;;  %564 = vmatpush.msrb.mxu3 %v490_v50  ;;  %v487_v59 = vld [vmem:[#allocation6 + $0x1b8] sm:$0xff]  ;;  %532 = vmatpush.msrb.mxu1 %v450_v2 }
 0x2ac   :  { %541 = vmatpush.msrb.mxu2 %v477_v34 }
 0x2ad   :  { %565 = vmatpush.msrb.mxu3 %v489_v53 }
 0x2ae   :  { %542 = vmatpush.msrb.mxu2 %v476_v37 }
 0x2af   :  { %566 = vmatpush.msrb.mxu3 %v488_v56 }
 0x2b0   :  { %543 = vmatpush.msrb.mxu2 %v475_v40 }
 0x2b1   :  { %v688_v60 = vpop.eup %687  ;;  %567 = vmatpush.msrb.mxu3 %v487_v59 }
 0x2b2   :  { %363 = vmax.xlane.f32.xlu2 %v362_v61  ;;  %v407_v62 = vadd.f32 1.0, %v688_v60  ;;  %544 = vmatpush.msrb.mxu2 %v474_v43  ;;  %v449_v60 = vld [vmem:[#allocation6 + $0x88] sm:$0xff]  ;;  %v468_v61 = vld [vmem:[#allocation6 + $0x120] sm:$0xff] }
 0x2b3   :  { %533 = vmatpush.msrb.mxu1 %v449_v60 }
 0x2b4   :  { %689 = vrcp.f32 %v407_v62  ;;  %v419_v4 = vand.u32 2147483648, %v407_v62  ;;  %v417_v6 = vand.u32 2147483647, %v407_v62  ;;  %vm413_vm2 = vweird.f32 %v407_v62  ;;  %545 = vmatpush.msrb.mxu2 %v473_v46 }
 0x2b6   :  { %v420_v8 = vor.u32 1.1754944e-38, %v419_v4  ;;  %vm418_vm4 = vcmp.eq.f32.partialorder %v417_v6, 8.507059e+37  ;;  %546 = vmatpush.msrb.mxu2 %v472_v49  ;;  %v484_v6 = vld [vmem:[#allocation6 + $0x1a0] sm:$0xff] }
 0x2b8   :  { %547 = vmatpush.msrb.mxu2 %v471_v52 }
 0x2ba   :  { %v690_v63 = vpop.eup %689  ;;  %548 = vmatpush.msrb.mxu2 %v470_v55 }
 0x2bb   :  { %v409_v0 = vmul.f32 %v690_v63, %v407_v62  ;;  %vm414_vm1 = vweird.f32 %v690_v63  ;;  %v486_v62 = vld [vmem:[#allocation6 + $0x1b0] sm:$0xff] }
 0x2bc   :  { %vm415_vm3 = vmor %vm413_vm2, %vm414_vm1  ;;  %549 = vmatpush.msrb.mxu2 %v469_v58  ;;  %568 = vmatpush.msrb.mxu3 %v486_v62 }
 0x2bd   :  { %v410_v3 = vsub.f32 1.0, %v409_v0  ;;  %v467_v0 = vld [vmem:[#allocation6 + $0x118] sm:$0xff] }
 0x2be   :  { %550 = vmatpush.msrb.mxu2 %v468_v61 }
 0x2bf   :  { %v411_v5 = vmul.f32 %v690_v63, %v410_v3  ;;  %v485_v3 = vld [vmem:[#allocation6 + $0x1a8] sm:$0xff] }
 0x2c0   :  { %551 = vmatpush.msrb.mxu2 %v467_v0  ;;  %569 = vmatpush.msrb.mxu3 %v485_v3 }
 0x2c1   :  { %v412_v7 = vadd.f32 %v690_v63, %v411_v5  ;;  %v466_v5 = vld [vmem:[#allocation6 + $0x110] sm:$0xff] }
 0x2c2   :  { %552 = vmatpush.msrb.mxu2 %v466_v5  ;;  %570 = vmatpush.msrb.mxu3 %v484_v6 }
 0x2c3   :  { %v416_v9 = vsel %vm415_vm3, %v690_v63, %v412_v7  ;;  %v448_v63 = vld [vmem:[#allocation6 + $0x80] sm:$0xff]  ;;  %v465_v7 = vld [vmem:[#allocation6 + $0x108] sm:$0xff] }
 0x2c4   :  { %v421_v10 = vsel %vm418_vm4, %v420_v8, %v416_v9  ;;  %534 = vmatpush.msrb.mxu1 %v448_v63  ;;  %v483_v8 = vld [vmem:[#allocation6 + $0x198] sm:$0xff]  ;;  %v464_v9 = vld [vmem:[#allocation6 + $0x100] sm:$0xff]  ;;  %553 = vmatpush.msrb.mxu2 %v465_v7 }
 0x2c5   :  { %v423_v11 = vmul.f32 %v421_v10, %v891_v57  ;;  %v482_v10 = vld [vmem:[#allocation6 + $0x190] sm:$0xff]  ;;  %571 = vmatpush.msrb.mxu3 %v483_v8  ;;  %v674_v63 = vld [vmem:[%s927_s8] ss:$0 sm:$0xff]  ;;  %s635_s8 = sshll.u32 %s781_s7, 4  ;;  %s636_s8 = int_to_ptr.vmem [resolvable:$true] %s635_s8 }
 0x2c6   :  { %554 = vmatpush.msrb.mxu2 %v464_v9 }
 0x2c7   :  { %515 = vmatmul.f32.vlgmr.msrb.gmra.mxu0 %v423_v11  ;;  %572 = vmatpush.msrb.mxu3 %v482_v10 }
 0x31d   :  { %v354_v12 = vpop.xlane.xlu2 %353 }
 0x31e   :  { %v355_v13 = vrot.slane %v354_v12, 4 }
 0x320   :  { %v356_v14 = vmin.f32 %v354_v12, %v355_v13  ;;  %v481_v13 = vld [vmem:[#allocation6 + $0x188] sm:$0xff] }
 0x321   :  { %573 = vmatpush.msrb.mxu3 %v481_v13 }
 0x322   :  { %v357_v15 = vrot.slane %v356_v14, 2 }
 0x324   :  { %v358_v16 = vmin.f32 %v356_v14, %v357_v15  ;;  %v480_v15 = vld [vmem:[#allocation6 + $0x180] sm:$0xff] }
 0x325   :  { %v364_v17 = vpop.xlane.xlu2 %363  ;;  %574 = vmatpush.msrb.mxu3 %v480_v15 }
 0x326   :  { %v365_v18 = vrot.slane %v364_v17, 4  ;;  %v359_v19 = vrot.slane %v358_v16, 1 }
 0x328   :  { %v366_v20 = vmax.f32 %v364_v17, %v365_v18  ;;  %v360_v21 = vmin.f32 %v358_v16, %v359_v19 }
 0x32a   :  { %v367_v22 = vrot.slane %v366_v20, 2  ;;  %660 = vpush %v360_v21 }
 0x32c   :  { %v368_v23 = vmax.f32 %v366_v20, %v367_v22 }
 0x32e   :  { %v369_v24 = vrot.slane %v368_v23, 1 }
 0x330   :  { %v370_v25 = vmax.f32 %v368_v23, %v369_v24 }
 0x332   :  { %662 = vpush %v370_v25 }
 0x344   :  { %v516_v39 = vpop.f32.mrf.mxu0 }
 0x345   :  { %v517_v41 = vadd.f32 %v672_v38, %v516_v39 }
 0x35b   :  { %s901_s3 = spop %660 }
 0x35c   :  { %v372_v14 = vstv %s901_s3 }
 0x35d   :  { %v373_v18 = vsub.f32 %v891_v57, %v372_v14 }
 0x35f   :  { %v374_v23 = vmul.f32 2.0, %v373_v18 }
 0x363   :  { %s663_s4 = spop %662 }
 0x364   :  { %s375_s28 = ssub.f32 %s663_s4, %s901_s3 }
 0x366   :  { %v376_v4 = vstv %s375_s28 }
 0x367   :  { %691 = vrcp.f32 %v376_v4  ;;  %v388_v17 = vand.u32 2147483648, %v376_v4  ;;  %v386_v20 = vand.u32 2147483647, %v376_v4  ;;  %vm382_vm6 = vweird.f32 %v376_v4 }
 0x369   :  { %v389_v22 = vor.u32 1.1754944e-38, %v388_v17  ;;  %vm387_vm8 = vcmp.eq.f32.partialorder %v386_v20, 8.507059e+37 }
 0x36d   :  { %v692_v11 = vpop.eup %691 }
 0x36e   :  { %v378_v12 = vmul.f32 %v692_v11, %v376_v4  ;;  %vm383_vm5 = vweird.f32 %v692_v11 }
 0x36f   :  { %vm384_vm7 = vmor %vm382_vm6, %vm383_vm5 }
 0x370   :  { %v379_v16 = vsub.f32 1.0, %v378_v12 }
 0x372   :  { %v380_v19 = vmul.f32 %v692_v11, %v379_v16 }
 0x374   :  { %v381_v21 = vadd.f32 %v692_v11, %v380_v19 }
 0x376   :  { %v385_v24 = vsel %vm384_vm7, %v692_v11, %v381_v21 }
 0x377   :  { %v390_v25 = vsel %vm387_vm8, %v389_v22, %v385_v24 }
 0x378   :  { %v391_v26 = vmul.f32 %v390_v25, %v374_v23 }
 0x37a   :  { %v652_v27 = vadd.f32 -1.0, %v391_v26 }
 0x37c   :  { %v393_v28 = vadd.f32 1.0, %v652_v27 }
 0x37e   :  { %v394_v29 = vmul.f32 0.5, %v393_v28 }
 0x380   :  { %v395_v30 = vmul.f32 19999.0, %v394_v29 }
 0x382   :  { %v396_v31 = vfloor.f32 %v395_v30 }
 0x384   :  { %v397_v32 = vmul.f32 0.000100005, %v396_v31 }
 0x386   :  { %v398_v57 = vadd.f32 -1.0, %v397_v32 }
 0x388   :  { %535 = vmatmul.f32.vlgmr.msrb.gmra.mxu1 %v398_v57  ;;  %v399_v33 = vmul.f32 2.0, %v398_v57 }
 0x38a   :  { %v400_v34 = vmul.f32 %v399_v33, %v398_v57 }
 0x38c   :  { %v653_v35 = vadd.f32 -1.0, %v400_v34 }
 0x38e   :  { %555 = vmatmul.f32.vlgmr.msrb.gmra.mxu2 %v653_v35  ;;  %v402_v36 = vmul.f32 %v653_v35, %v399_v33 }
 0x390   :  { %v403_v37 = vsub.f32 %v402_v36, %v398_v57 }
 0x392   :  { %575 = vmatmul.f32.vlgmr.msrb.gmra.mxu3 %v403_v37 }
 0x405   :  { %v536_v40 = vpop.f32.mrf.mxu1 }
 0x406   :  { %v537_v43 = vadd.f32 %v536_v40, %v517_v41 }
 0x411   :  { %v556_v42 = vpop.f32.mrf.mxu2 }
 0x412   :  { %v557_v44 = vadd.f32 %v556_v42, %v537_v43 }
 0x415   :  { %v576_v45 = vpop.f32.mrf.mxu3 }
 0x416   :  { %v577_v46 = vadd.f32 %v576_v45, %v557_v44 }
 0x418   :  { %579 = vadd.xlane.f32.xlu0 %v577_v46 }
 0x48b   :  { %v580_v47 = vpop.xlane.xlu0 %579 }
 0x48c   :  { %v581_v48 = vmul.f32 0.0625, %v580_v47 }
 0x48e   :  { %v583_v49 = vsub.f32 %v577_v46, %v581_v48 }
 0x490   :  { %v584_v50 = vsel %vm582_vm9, %v583_v49, 0.0 }
 0x491   :  { %v585_v51 = vmul.f32 %v584_v50, %v584_v50 }
 0x493   :  { %586 = vadd.xlane.f32.xlu1 %v585_v51 }
 0x506   :  { %v587_v52 = vpop.xlane.xlu1 %586 }
 0x507   :  { %v588_v53 = vmul.f32 0.0625, %v587_v52 }
 0x509   :  { %v589_v54 = vadd.f32 1e-05, %v588_v53 }
 0x50b   :  { %693 = vrsqrt.f32 %v589_v54  ;;  %vm596_vm11 = vweird.f32 %v589_v54 }
 0x511   :  { %v694_v55 = vpop.eup %693 }
 0x512   :  { %v591_v56 = vmul.f32 %v694_v55, %v589_v54  ;;  %vm597_vm10 = vweird.f32 %v694_v55 }
 0x513   :  { %vm598_vm12 = vmor %vm596_vm11, %vm597_vm10 }
 0x514   :  { %v592_v2 = vmul.f32 %v694_v55, %v591_v56 }
 0x516   :  { %v593_v58 = vmul.f32 0.5, %v592_v2 }
 0x518   :  { %v594_v59 = vsub.f32 1.5, %v593_v58 }
 0x51a   :  { %v595_v60 = vmul.f32 %v694_v55, %v594_v59 }
 0x51c   :  { %v599_v61 = vsel %vm598_vm12, %v694_v55, %v595_v60 }
 0x51d   :  { %v600_v62 = vmul.f32 %v599_v61, %v583_v49 }
 0x51f   :  { %v604_v0 = vmul.f32 %v673_v1, %v600_v62 }
 0x521   :  { %v608_v3 = vadd.f32 %v674_v63, %v604_v0 }
 0x523   :  { %v655_v4 = vmul.f32 -1.442695, %v608_v3 }
 0x525   :  { %695 = vpow2.f32 %v655_v4 }
 0x52b   :  { %v696_v5 = vpop.eup %695 }
 0x52c   :  { %v612_v6 = vadd.f32 1.0, %v696_v5 }
 0x52e   :  { %697 = vrcp.f32 %v612_v6  ;;  %v624_v10 = vand.u32 2147483648, %v612_v6  ;;  %v622_v12 = vand.u32 2147483647, %v612_v6  ;;  %vm618_vm14 = vweird.f32 %v612_v6 }
 0x530   :  { %v625_v14 = vor.u32 1.1754944e-38, %v624_v10  ;;  %vm623_vm0 = vcmp.eq.f32.partialorder %v622_v12, 8.507059e+37 }
 0x534   :  { %v698_v7 = vpop.eup %697 }
 0x535   :  { %v614_v8 = vmul.f32 %v698_v7, %v612_v6  ;;  %vm619_vm13 = vweird.f32 %v698_v7 }
 0x536   :  { %vm620_vm15 = vmor %vm618_vm14, %vm619_vm13 }
 0x537   :  { %v615_v9 = vsub.f32 1.0, %v614_v8 }
 0x539   :  { %v616_v11 = vmul.f32 %v698_v7, %v615_v9 }
 0x53b   :  { %v617_v13 = vadd.f32 %v698_v7, %v616_v11 }
 0x53d   :  { %v621_v15 = vsel %vm620_vm15, %v698_v7, %v617_v13 }
 0x53e   :  { %v626_v16 = vsel %vm623_vm0, %v625_v14, %v621_v15 }
 0x53f   :  { %v628_v17 = vmul.f32 %v626_v16, %v608_v3 }
 0x541   :  { %629 = vst [vmem:[#allocation8] sm:$0xff] %v628_v17 }
 0x542   :  { %640 = dma.vmem_to_hbm [thread:$0]  %s636_s8, 128, %s638_s15, [#allocation5]  }
 0x543   :  { %775 = dma.done.wait [#allocation5], 128  }
 0x544   :  { %776 = vsyncadd [#allocation5], 4294967168 }
 0x545   :  { %645 = vsyncpa [#allocation4], 1 }
 0x546   :  { %646 = vsyncpa [#allocation7], 1 }
 0x547   :  { %647 = vsyncpa [#allocation5], 1 }

</bundles_post_ra>
